<compile_context>
chip_gen: v5e
topology: v5e:2x2
jax: 0.10.0
libtpu: 0.0.40
codegen_flags: <defaults>
</compile_context>

<pallas_src>
import functools

import jax
import jax.numpy as jnp
import numpy as np
from jax.experimental import pallas as pl
from jax.experimental.pallas import tpu as pltpu


# ----------------------------------------------------------------------------- helpers
def _cdiv(a, b):
    return -(-a // b)


def _round_up(a, m):
    return _cdiv(a, m) * m


def _choose_tile(dim, max_tile, align):
    """Largest legal block size <= max_tile for an axis of length `dim`.

    A block equal to the full axis extent is always legal (even unaligned);
    otherwise the block must be a multiple of `align` (edge tiles are masked).
    """
    if dim <= max_tile:
        return dim
    return max(align, (max_tile // align) * align)


def _vmem_limit_bytes():
    # Per-generation scoped-VMEM limit: ~85% of physical, capped at 100 MiB.
    # v5e/v6e have 128 MiB physical (default scoped limit is only 16/32 MiB);
    # v7x has 64 MiB, so never exceed ~54 MiB there.
    try:
        cap = pltpu.get_tpu_info().vmem_capacity_bytes
    except Exception:
        cap = 64 * 1024 * 1024
    return int(min(cap * 0.85, 100 * 1024 * 1024))


# ----------------------------------------------------------------------------- kernels
def _linear_bias_act_kernel(x_ref, w_ref, b_ref, o_ref, *, activation):
    # Single K step (weight-resident / single-K-tile path).
    # x_ref: (bm, bk)  w_ref: (bk, bn)  b_ref: (1, bn) f32  o_ref: (bm, bn)
    y = jnp.dot(x_ref[...], w_ref[...], preferred_element_type=jnp.float32)
    y = y + b_ref[...].astype(jnp.float32)
    o_ref[...] = activation(y).astype(o_ref.dtype)


def _linear_bias_act_acc_kernel(x_ref, w_ref, b_ref, o_ref, acc_ref, *, activation):
    # K is split across grid axis 2: accumulate in f32, finalize on the last step.
    k = pl.program_id(2)

    @pl.when(k == 0)
    def _():
        acc_ref[...] = jnp.zeros_like(acc_ref)

    acc_ref[...] += jnp.dot(x_ref[...], w_ref[...], preferred_element_type=jnp.float32)

    @pl.when(k == pl.num_programs(2) - 1)
    def _():
        y = acc_ref[...] + b_ref[...].astype(jnp.float32)
        o_ref[...] = activation(y).astype(o_ref.dtype)


# ----------------------------------------------------------------------------- wrapper
def nonlinear_forward(
    x,
    weight,
    bias,
    activation=None,
    *,
    compute_dtype=jnp.bfloat16,
    tm=512,
    tn=1024,
    tk=1024,
    weight_resident_budget=32 * 1024 * 1024,
):
    """Pallas implementation of NonLinear.forward: activate(x @ W.T + b).

    x:      (..., input_size)           (leading dims flattened to a batch)
    weight: (hidden_size, input_size)   PyTorch nn.Linear layout
    bias:   (hidden_size,)
    activation: None (identity) or an elementwise callable.
    """
    if activation is None:
        activation = lambda v: v
    if not callable(activation):
        raise ValueError("activation must be callable: type={}".format(type(activation)))

    orig_shape = x.shape
    K = orig_shape[-1]
    x2 = x.reshape(-1, K)
    M = x2.shape[0]
    N, K2 = weight.shape
    assert K == K2, "input_size mismatch"

    compute_dtype = jnp.dtype(compute_dtype)
    out_dtype = x.dtype
    c_isz = compute_dtype.itemsize
    o_isz = jnp.dtype(out_dtype).itemsize

    # --- parameter / input prep (weight side should be hoisted to init; see TODO) ---
    xc = x2.astype(compute_dtype)                    # half the HBM stream for bf16
    w_t = weight.T.astype(compute_dtype)             # (K, N): plain K-contraction on MXU
    b2 = bias.reshape(1, N).astype(jnp.float32)      # f32 epilogue (no bf16 VPU on v5e)

    # --- tile selection -------------------------------------------------------------
    bm = _choose_tile(M, tm, 8)

    # Weight-resident fast path: full (K, N) weight + bias stay in VMEM, weight is
    # DMA'd once, grid only iterates over M, no reduction axis, no accumulator.
    weight_bytes = 2 * K * N * c_isz + N * 4                       # 2x: double buffering
    step_bytes = 2 * bm * K * c_isz + 2 * bm * N * o_isz           # x tile + out tile (x2)
    if weight_bytes + step_bytes <= weight_resident_budget:
        bn, bk = N, K
    else:
        bn = _choose_tile(N, tn, 128)
        bk = _choose_tile(K, tk, 128)

    # v7x has 2 TensorCores sharded over the "parallel" grid axes: if the M/N grid
    # would be a single tile, split M so both cores get work. (16-sublane multiple
    # keeps bf16 blocks aligned.)
    if _cdiv(M, bm) * _cdiv(N, bn) < 2 and M > 16:
        bm = _round_up(_cdiv(M, 2), 16)

    # Only K needs zero padding, and only when it is actually split across grid
    # steps (garbage K columns would otherwise corrupt valid accumulator entries).
    Kp = K
    if K > bk and K % bk != 0:
        Kp = _round_up(K, bk)
        xc = jnp.pad(xc, ((0, 0), (0, Kp - K)))
        w_t = jnp.pad(w_t, ((0, Kp - K), (0, 0)))

    grid = (_cdiv(M, bm), _cdiv(N, bn), _cdiv(Kp, bk))

    if grid[2] == 1:
        kernel = functools.partial(_linear_bias_act_kernel, activation=activation)
        scratch = []
    else:
        kernel = functools.partial(_linear_bias_act_acc_kernel, activation=activation)
        scratch = [pltpu.VMEM((bm, bn), jnp.float32)]

    # HBM traffic estimate with the actual re-streaming factors:
    #   x is streamed once per N tile; W is streamed once per M tile unless resident.
    w_streams = 1 if (grid[1] == 1 and grid[2] == 1) else grid[0]
    cost = pl.CostEstimate(
        flops=2 * M * N * Kp,
        transcendentals=0,
        bytes_accessed=c_isz * (M * Kp * grid[1] + Kp * N * w_streams)
        + o_isz * M * N
        + 4 * N,
    )

    out = pl.pallas_call(
        kernel,
        out_shape=jax.ShapeDtypeStruct((M, N), out_dtype),
        grid_spec=pltpu.PrefetchScalarGridSpec(
            num_scalar_prefetch=0,
            grid=grid,
            in_specs=[
                pl.BlockSpec((bm, bk), lambda i, j, k: (i, k)),   # x tile
                pl.BlockSpec((bk, bn), lambda i, j, k: (k, j)),   # W.T tile (K, N)
                pl.BlockSpec((1, bn), lambda i, j, k: (0, j)),    # bias tile
            ],
            out_specs=pl.BlockSpec((bm, bn), lambda i, j, k: (i, j)),
            scratch_shapes=scratch,
        ),
        compiler_params=pltpu.CompilerParams(
            # M and N tiles are independent (megacore-shardable); K is the reduction.
            dimension_semantics=("parallel", "parallel", "arbitrary"),
            vmem_limit_bytes=_vmem_limit_bytes(),
        ),
        cost_estimate=cost,
    )(xc, w_t, b2)

    return out.reshape(orig_shape[:-1] + (N,))


# ----------------------------------------------------------------------------- init
def orthonormal_initializer(output_size, input_size, seed=0):
    """Deterministic orthonormal-style init matching the module's W shape
    (hidden_size, input_size): QR of a fixed Gaussian gives orthonormal columns,
    which is the intent of sempca's iterative initializer."""
    rng = np.random.RandomState(seed)
    a = rng.randn(output_size, input_size).astype(np.float32)
    q, _ = np.linalg.qr(a)
    return q.astype(np.float32)


# ----------------------------------------------------------------------------- demo
if __name__ == "__main__":
    input_size = 32
    hidden_size = 64
    batch, seq = 2, 8

    # Deterministic parameters (NonLinear.reset_parameters semantics:
    # orthonormal weight, zero bias).
    W = jnp.asarray(orthonormal_initializer(hidden_size, input_size, seed=0))
    b = jnp.zeros((hidden_size,), dtype=jnp.float32)

    # Deterministic input with a leading (batch, seq) to exercise flattening.
    key = jax.random.PRNGKey(0)
    x = jax.random.normal(key, (batch, seq, input_size), dtype=jnp.float32)

    # Default module config: activation=None (identity), bf16 MXU path.
    y = jax.block_until_ready(nonlinear_forward(x, W, b, activation=None))

    # Callable activation (as the module allows), e.g. tanh.
    y_tanh = jax.block_until_ready(nonlinear_forward(x, W, b, activation=jnp.tanh))

    # Full-f32 compute path (exact check).
    y_f32 = jax.block_until_ready(
        nonlinear_forward(x, W, b, activation=None, compute_dtype=jnp.float32)
    )

    # Reference in plain JAX.
    ref = x @ W.T + b
    ref_tanh = jnp.tanh(ref)

    assert y.shape == ref.shape
    # bf16 MXU inputs with an f32 accumulator: loosened tolerance vs f32 reference.
    assert jnp.allclose(y, ref, atol=5e-2, rtol=5e-2)
    assert jnp.allclose(y_tanh, ref_tanh, atol=5e-2, rtol=5e-2)
    # f32 compute path matches tightly.
    assert jnp.allclose(y_f32, ref, atol=1e-5, rtol=1e-5)

    print("KERNEL_OK")
</pallas_src>

<mosaic_0001>
module attributes {stable_mosaic.version = 11 : i64} {
  func.func @_linear_bias_act_kernel(%arg0: i32, %arg1: i32, %arg2: i32, %arg3: memref<16x32xbf16, #tpu.memory_space<vmem>>, %arg4: memref<32x64xbf16, #tpu.memory_space<vmem>>, %arg5: memref<1x64xf32, #tpu.memory_space<vmem>>, %arg6: memref<16x64xf32, #tpu.memory_space<vmem>>) attributes {dimension_semantics = [#tpu.dimension_semantics<parallel>, #tpu.dimension_semantics<parallel>, #tpu.dimension_semantics<arbitrary>], iteration_bounds = array<i64: 1, 1, 1>, scalar_prefetch = 0 : i64, scratch_operands = 0 : i64, tpu.core_type = #tpu.core_type<tc>, window_params = [{transform_indices = @transform_0, window_bounds = array<i64: 16, 32>}, {transform_indices = @transform_1, window_bounds = array<i64: 32, 64>}, {transform_indices = @transform_2, window_bounds = array<i64: 1, 64>}, {transform_indices = @transform_3, window_bounds = array<i64: 16, 64>}]} {
    %c0 = arith.constant 0 : index
    %c0_0 = arith.constant 0 : index
    %0 = vector.load %arg3[%c0, %c0_0] : memref<16x32xbf16, #tpu.memory_space<vmem>>, vector<16x32xbf16>
    %c0_1 = arith.constant 0 : index
    %c0_2 = arith.constant 0 : index
    %1 = vector.load %arg4[%c0_1, %c0_2] : memref<32x64xbf16, #tpu.memory_space<vmem>>, vector<32x64xbf16>
    %cst = arith.constant dense<0.000000e+00> : vector<16x64xf32>
    %2 = tpu.matmul %0, %1, %cst {dimension_numbers = #tpu.dot_dimension_numbers<[1], [0], [0], [1], [0, 0, 1, 1], [], []>} : vector<16x32xbf16>, vector<32x64xbf16>, vector<16x64xf32> -> vector<16x64xf32>
    %c0_3 = arith.constant 0 : index
    %c0_4 = arith.constant 0 : index
    %3 = vector.load %arg5[%c0_3, %c0_4] : memref<1x64xf32, #tpu.memory_space<vmem>>, vector<1x64xf32>
    %4 = vector.broadcast %3 : vector<1x64xf32> to vector<16x64xf32>
    %5 = arith.addf %2, %4 : vector<16x64xf32>
    %c0_5 = arith.constant 0 : index
    %c0_6 = arith.constant 0 : index
    %6 = vector.load %arg6[%c0_5, %c0_6] : memref<16x64xf32, #tpu.memory_space<vmem>>, vector<16x64xf32>
    tpu.vector_store %arg6[%c0_5, %c0_6], %5 {strides = array<i32>} : memref<16x64xf32, #tpu.memory_space<vmem>>, vector<16x64xf32>,
    return
  }
  func.func @transform_0(%arg0: i32, %arg1: i32, %arg2: i32) -> (i32, i32) {
    %c0_i32 = arith.constant 0 : i32
    return %arg0, %arg2 : i32, i32
  }
  func.func @transform_1(%arg0: i32, %arg1: i32, %arg2: i32) -> (i32, i32) {
    %c0_i32 = arith.constant 0 : i32
    return %arg2, %arg1 : i32, i32
  }
  func.func @transform_2(%arg0: i32, %arg1: i32, %arg2: i32) -> (i32, i32) {
    %c0_i32 = arith.constant 0 : i32
    %c0_i32_0 = arith.constant 0 : i32
    return %c0_i32, %arg1 : i32, i32
  }
  func.func @transform_3(%arg0: i32, %arg1: i32, %arg2: i32) -> (i32, i32) {
    %c0_i32 = arith.constant 0 : i32
    return %arg0, %arg1 : i32, i32
  }
}

</mosaic_0001>

<bundles_post_ra>
// kernel: tpu_custom_call.1
= control target key start
LH: loop header
LB: loop body
LE: loop exit
PB: predicated region body
PF: predicated region fallthrough
CT: control target
= control target key end

     0   :  { %8 = vsyncpa [#allocation3], 0  ;;  %s257_s0 = inlined_call_operand.hbm [shape: bf16[16,32], index: 0, kind: input, shape index: {}]   ;;  %s258_s1 = inlined_call_operand.hbm [shape: bf16[32,64], index: 1, kind: input, shape index: {}]   ;;  %s259_s2 = inlined_call_operand.vmem [shape: f32[1,64], index: 2, kind: input, shape index: {}]   ;;  %s260_s3 = inlined_call_operand.hbm [shape: f32[16,64], index: 3, kind: output, shape index: {}]  }
   0x1   :  { %9 = vsyncpa [#allocation6], 0 }
   0x2   :  { %10 = vsyncpa [#allocation4], 0  ;;  %s15_s14 = sshll.u32 %s257_s0, 4  ;;  %s218_s15 = smov [#allocation2]   ;;  %s16_s14 = int_to_ptr.hbm [resolvable:$true] %s15_s14 }
   0x3   :  { %s17_s16 = sshll.u32 %s218_s15, 4  ;;  %s28_s19 = sshll.u32 %s258_s1, 4  ;;  %s18_s16 = int_to_ptr.vmem [resolvable:$true] %s17_s16  ;;  %s29_s19 = int_to_ptr.hbm [resolvable:$true] %s28_s19 }
   0x4   :  { %s219_s20 = smov 64   ;;  %s220_s21 = smov 4  }
   0x5   :  { %23 = dma.hbm_to_vmem [thread:$0]  %s16_s14, 128, %s18_s16, [#allocation3], %s219_s20, %s219_s20, %s220_s21  }
   0x6   :  { %s221_s22 = smov [#allocation5]  }
   0x7   :  { %s30_s23 = sshll.u32 %s221_s22, 4  ;;  %s31_s23 = int_to_ptr.vmem [resolvable:$true] %s30_s23 }
   0x8   :  { %36 = dma.hbm_to_vmem [thread:$0]  %s29_s19, 256, %s31_s23, [#allocation6], %s219_s20, %s219_s20, %s220_s21  }
   0x9   :  { %212 = dma.done.wait [#allocation3], 128  }
   0xa   :  { %213 = vsyncadd [#allocation3], 4294967168 }
   0xb   :  { %214 = dma.done.wait [#allocation6], 256  }
   0xc   :  { %215 = vsyncadd [#allocation6], 4294967040  ;;  %v131_v0 = vld [vmem:[#allocation5 + $0x8] sm:$0xff]  ;;  %v130_v1 = vld [vmem:[#allocation5] sm:$0xff]  ;;  %vm75_vm0 = vcmask 261120   ;;  %vm93_vm1 = vcmask 523264  }
   0xd   :  { %85 = vmatpush.bf16.msra.mxu0 %v131_v0  ;;  %v129_v2 = vld [vmem:[#allocation2] sm:$0xff]  ;;  %s222_s24 = smov [#allocation7]   ;;  %s102_s28 = sshll.u32 %s260_s3, 4  ;;  %s103_s28 = int_to_ptr.hbm [resolvable:$true] %s102_s28 }
   0xe   :  { %v139_v3 = vld [vmem:[%s259_s2] ss:$0 sm:$0xff]  ;;  %s100_s25 = sshll.u32 %s222_s24, 4  ;;  %s223_s29 = smov 128   ;;  %s101_s25 = int_to_ptr.vmem [resolvable:$true] %s100_s25 }
   0xf   :  { %s224_s30 = smov 8  }
  0x11   :  { %86 = vmatpush.bf16.msra.mxu0 %v130_v1 }
  0x14   :  { %128 = vmatmul.msk.bf16.vlgmr.msra.gmra.mxu0 %vm75_vm0, %v129_v2 }
  0x91   :  { %v88_v4 = vpop.f32.mrf.mxu0 }
  0x92   :  { %v89_v5 = vadd.f32 %v139_v3, %v88_v4 }
  0x94   :  { %94 = vst.msk [vmem:[#allocation7] sm:$0xff] %vm93_vm1, %v89_v5 }
  0x99   :  { %v90_v6 = vpop.f32.mrf.mxu0 }
  0x9a   :  { %v91_v7 = vadd.f32 %v139_v3, %v90_v6 }
  0x9c   :  { %95 = vst.msk [vmem:[#allocation7 + $0x8] sm:$0xff] %vm93_vm1, %v91_v7 }
  0x9d   :  { %108 = dma.vmem_to_hbm [thread:$0]  %s101_s25, 256, %s103_s28, [#allocation4], %s223_s29, %s223_s29, %s224_s30  }
  0x9e   :  { %216 = dma.done.wait [#allocation4], 256  }
  0x9f   :  { %217 = vsyncadd [#allocation4], 4294967040 }
  0xa0   :  { %113 = vsyncpa [#allocation3], 1 }
  0xa1   :  { %114 = vsyncpa [#allocation6], 1 }
  0xa2   :  { %115 = vsyncpa [#allocation4], 1 }

</bundles_post_ra>
